<compile_context>
chip_gen: v7x
topology: tpu7x:2x2x1
jax: 0.10.0
libtpu: 0.0.40
codegen_flags: <defaults>
</compile_context>

<pallas_src>
import jax
import jax.numpy as jnp
from jax.experimental import pallas as pl
from jax.experimental.pallas import tpu as pltpu

STATE_DIM = 16
ACTION_DIM = 6
H1 = 128
H2 = 64

TM_MAX = 2048       # batch-tile sweet spot (amortizes ~0.35us/step, fits scoped VMEM)
SUBLANE_ALIGN = 16  # works for both f32 (8) and bf16 (16) sublane packing
VMEM_LIMIT_BYTES = 32 * 1024 * 1024  # explicit so v5e (16MiB default) doesn't OOM


def _round_up(x, m):
    return ((x + m - 1) // m) * m


def dqn_kernel(x_ref, w1_ref, b1_ref, w2_ref, b2_ref, w3_ref, b3_ref, o_ref):
    # fc1 + relu (f32 accumulate on MXU, bias/ReLU on VPU in f32)
    h1 = jnp.dot(x_ref[...], w1_ref[...], preferred_element_type=jnp.float32)
    h1 = jnp.maximum(h1 + b1_ref[...], 0.0).astype(w2_ref.dtype)
    # fc2 + relu
    h2 = jnp.dot(h1, w2_ref[...], preferred_element_type=jnp.float32)
    h2 = jnp.maximum(h2 + b2_ref[...], 0.0).astype(w3_ref.dtype)
    # fc3 (no activation)
    out = jnp.dot(h2, w3_ref[...], preferred_element_type=jnp.float32)
    o_ref[...] = (out + b3_ref[...]).astype(o_ref.dtype)


def dqn_forward(x, w1, b1, w2, b2, w3, b3, *, tm_max=TM_MAX,
                weight_dtype=jnp.bfloat16):
    """Fused 3-layer MLP forward.

    weight_dtype=jnp.bfloat16 (default) casts x and the weights to bf16 for MXU
    throughput; accumulation stays f32 and the output stays f32.  Pass
    weight_dtype=None for a pure-f32 path (bit-accurate vs. the reference).
    """
    if weight_dtype is not None:
        x = x.astype(weight_dtype)
        w1 = w1.astype(weight_dtype)
        w2 = w2.astype(weight_dtype)
        w3 = w3.astype(weight_dtype)

    B = x.shape[0]
    # Pad batch to sublane alignment.
    pad_b = _round_up(B, SUBLANE_ALIGN)

    # Pick the batch tile:
    #   * cap at tm_max,
    #   * prefer >=2 grid steps (v7x megacore) whenever pad_b allows it,
    #   * always re-round to the sublane multiple after the min().
    tm = min(tm_max, pad_b)
    if pad_b >= 2 * SUBLANE_ALIGN:
        # Split the batch in (at least) two so ("parallel",) can shard across
        # v7x's two TensorCores; for pad_b > 2*tm_max this is already >= 2.
        tm = min(tm, _round_up(pl.cdiv(pad_b, 2), SUBLANE_ALIGN))
    tm = _round_up(tm, SUBLANE_ALIGN)
    pad_b = _round_up(pad_b, tm)
    if pad_b != B:
        x = jnp.pad(x, ((0, pad_b - B), (0, 0)))
    grid = (pad_b // tm,)

    itemsize = jnp.dtype(x.dtype).itemsize
    weight_bytes = (w1.size + w2.size + w3.size) * itemsize \
        + (b1.size + b2.size + b3.size) * 4
    cost = pl.CostEstimate(
        flops=2 * pad_b * (STATE_DIM * H1 + H1 * H2 + H2 * ACTION_DIM),
        transcendentals=0,
        bytes_accessed=pad_b * STATE_DIM * itemsize + weight_bytes
        + pad_b * ACTION_DIM * 4,
    )

    const2 = lambda i: (0, 0)   # weights/biases: same (whole-array) block every step
    grid_spec = pltpu.PrefetchScalarGridSpec(
        num_scalar_prefetch=0,
        grid=grid,
        in_specs=[
            pl.BlockSpec((tm, STATE_DIM), lambda i: (i, 0)),   # x: streamed per tile
            pl.BlockSpec((STATE_DIM, H1), const2),             # w1: VMEM-resident
            pl.BlockSpec((1, H1), const2),                     # b1
            pl.BlockSpec((H1, H2), const2),                    # w2
            pl.BlockSpec((1, H2), const2),                     # b2
            pl.BlockSpec((H2, ACTION_DIM), const2),            # w3
            pl.BlockSpec((1, ACTION_DIM), const2),             # b3
        ],
        out_specs=pl.BlockSpec((tm, ACTION_DIM), lambda i: (i, 0)),
    )

    out = pl.pallas_call(
        dqn_kernel,
        out_shape=jax.ShapeDtypeStruct((pad_b, ACTION_DIM), jnp.float32),
        grid_spec=grid_spec,
        compiler_params=pltpu.CompilerParams(
            # batch axis is independent -> shards across v7x's 2 TCs, no-op on v5e/v6e
            dimension_semantics=("parallel",),
            vmem_limit_bytes=VMEM_LIMIT_BYTES,
        ),
        cost_estimate=cost,
    )(x, w1, b1, w2, b2, w3, b3)

    return out[:B]


def init_params(key):
    """Deterministic PyTorch-style nn.Linear init: U(-1/sqrt(fan_in), 1/sqrt(fan_in))."""
    def linear(key, fan_in, fan_out):
        kw, kb = jax.random.split(key)
        bound = 1.0 / jnp.sqrt(fan_in)
        # store weight as [in, out] (transpose of torch's [out, in])
        w = jax.random.uniform(kw, (fan_in, fan_out), jnp.float32, -bound, bound)
        b = jax.random.uniform(kb, (1, fan_out), jnp.float32, -bound, bound)
        return w, b

    k1, k2, k3 = jax.random.split(key, 3)
    w1, b1 = linear(k1, STATE_DIM, H1)
    w2, b2 = linear(k2, H1, H2)
    w3, b3 = linear(k3, H2, ACTION_DIM)
    return w1, b1, w2, b2, w3, b3


def reference_forward(x, w1, b1, w2, b2, w3, b3):
    h1 = jnp.maximum(x @ w1 + b1, 0.0)
    h2 = jnp.maximum(h1 @ w2 + b2, 0.0)
    return h2 @ w3 + b3


if __name__ == "__main__":
    key = jax.random.PRNGKey(0)
    k_params, k_x = jax.random.split(key)

    params = init_params(k_params)

    # Small per-step inference batch (latency-bound by construction; the grid
    # path exists for large replay / vectorized-env batches).
    batch = 8
    x = jax.random.normal(k_x, (batch, STATE_DIM), jnp.float32)
    ref = reference_forward(x, *params)

    # Default path: bf16 operands, f32 MXU accumulation, f32 output.
    out_bf16 = jax.block_until_ready(dqn_forward(x, *params))
    assert out_bf16.shape == (batch, ACTION_DIM), out_bf16.shape
    assert jnp.allclose(out_bf16, ref, atol=5e-2, rtol=5e-2), "bf16 mismatch vs reference"

    # Full-f32 path: bit-tight check against the pure-JAX reference.
    out_f32 = jax.block_until_ready(dqn_forward(x, *params, weight_dtype=None))
    assert jnp.allclose(out_f32, ref, atol=1e-5, rtol=1e-5), "f32 mismatch vs reference"

    # Larger, non-tile-multiple batch: exercises padding, >=2 grid steps
    # (megacore split), and a non-sublane-aligned caller tm_max (robustness fix).
    x_big = jax.random.normal(k_x, (300, STATE_DIM), jnp.float32)
    ref_big = reference_forward(x_big, *params)
    out_big = jax.block_until_ready(dqn_forward(x_big, *params, weight_dtype=None,
                                                tm_max=100))
    assert out_big.shape == (300, ACTION_DIM)
    assert jnp.allclose(out_big, ref_big, atol=1e-5, rtol=1e-5), "gridded mismatch vs reference"

    out_big_bf16 = jax.block_until_ready(dqn_forward(x_big, *params))
    assert jnp.allclose(out_big_bf16, ref_big, atol=5e-2, rtol=5e-2), \
        "gridded bf16 mismatch vs reference"

    print("KERNEL_OK")
</pallas_src>

<mosaic_0001>
module attributes {stable_mosaic.version = 11 : i64} {
  func.func @dqn_kernel(%arg0: i32, %arg1: memref<16x16xbf16, #tpu.memory_space<vmem>>, %arg2: memref<16x128xbf16, #tpu.memory_space<vmem>>, %arg3: memref<1x128xf32, #tpu.memory_space<vmem>>, %arg4: memref<128x64xbf16, #tpu.memory_space<vmem>>, %arg5: memref<1x64xf32, #tpu.memory_space<vmem>>, %arg6: memref<64x6xbf16, #tpu.memory_space<vmem>>, %arg7: memref<1x6xf32, #tpu.memory_space<vmem>>, %arg8: memref<16x6xf32, #tpu.memory_space<vmem>>) attributes {dimension_semantics = [#tpu.dimension_semantics<parallel>], iteration_bounds = array<i64: 1>, scalar_prefetch = 0 : i64, scratch_operands = 0 : i64, tpu.core_type = #tpu.core_type<tc>, window_params = [{transform_indices = @transform_0, window_bounds = array<i64: 16, 16>}, {pipeline_mode = #tpu.pipeline_mode<synchronous>, transform_indices = @transform_1, window_bounds = array<i64: 16, 128>}, {pipeline_mode = #tpu.pipeline_mode<synchronous>, transform_indices = @transform_2, window_bounds = array<i64: 1, 128>}, {pipeline_mode = #tpu.pipeline_mode<synchronous>, transform_indices = @transform_3, window_bounds = array<i64: 128, 64>}, {pipeline_mode = #tpu.pipeline_mode<synchronous>, transform_indices = @transform_4, window_bounds = array<i64: 1, 64>}, {pipeline_mode = #tpu.pipeline_mode<synchronous>, transform_indices = @transform_5, window_bounds = array<i64: 64, 6>}, {pipeline_mode = #tpu.pipeline_mode<synchronous>, transform_indices = @transform_6, window_bounds = array<i64: 1, 6>}, {transform_indices = @transform_7, window_bounds = array<i64: 16, 6>}]} {
    %c0 = arith.constant 0 : index
    %c0_0 = arith.constant 0 : index
    %0 = vector.load %arg1[%c0, %c0_0] : memref<16x16xbf16, #tpu.memory_space<vmem>>, vector<16x16xbf16>
    %c0_1 = arith.constant 0 : index
    %c0_2 = arith.constant 0 : index
    %1 = vector.load %arg2[%c0_1, %c0_2] : memref<16x128xbf16, #tpu.memory_space<vmem>>, vector<16x128xbf16>
    %cst = arith.constant dense<0.000000e+00> : vector<16x128xf32>
    %2 = tpu.matmul %0, %1, %cst {dimension_numbers = #tpu.dot_dimension_numbers<[1], [0], [0], [1], [0, 0, 1, 1], [], []>} : vector<16x16xbf16>, vector<16x128xbf16>, vector<16x128xf32> -> vector<16x128xf32>
    %c0_3 = arith.constant 0 : index
    %c0_4 = arith.constant 0 : index
    %3 = vector.load %arg3[%c0_3, %c0_4] : memref<1x128xf32, #tpu.memory_space<vmem>>, vector<1x128xf32>
    %4 = vector.broadcast %3 : vector<1x128xf32> to vector<16x128xf32>
    %5 = arith.addf %2, %4 : vector<16x128xf32>
    %cst_5 = arith.constant 0.000000e+00 : f32
    %6 = vector.broadcast %cst_5 : f32 to vector<16x128xf32>
    %7 = arith.maximumf %5, %6 : vector<16x128xf32>
    %8 = arith.truncf %7 : vector<16x128xf32> to vector<16x128xbf16>
    %c0_6 = arith.constant 0 : index
    %c0_7 = arith.constant 0 : index
    %9 = vector.load %arg4[%c0_6, %c0_7] : memref<128x64xbf16, #tpu.memory_space<vmem>>, vector<128x64xbf16>
    %cst_8 = arith.constant dense<0.000000e+00> : vector<16x64xf32>
    %10 = tpu.matmul %8, %9, %cst_8 {dimension_numbers = #tpu.dot_dimension_numbers<[1], [0], [0], [1], [0, 0, 1, 1], [], []>} : vector<16x128xbf16>, vector<128x64xbf16>, vector<16x64xf32> -> vector<16x64xf32>
    %c0_9 = arith.constant 0 : index
    %c0_10 = arith.constant 0 : index
    %11 = vector.load %arg5[%c0_9, %c0_10] : memref<1x64xf32, #tpu.memory_space<vmem>>, vector<1x64xf32>
    %12 = vector.broadcast %11 : vector<1x64xf32> to vector<16x64xf32>
    %13 = arith.addf %10, %12 : vector<16x64xf32>
    %cst_11 = arith.constant 0.000000e+00 : f32
    %14 = vector.broadcast %cst_11 : f32 to vector<16x64xf32>
    %15 = arith.maximumf %13, %14 : vector<16x64xf32>
    %16 = arith.truncf %15 : vector<16x64xf32> to vector<16x64xbf16>
    %c0_12 = arith.constant 0 : index
    %c0_13 = arith.constant 0 : index
    %17 = vector.load %arg6[%c0_12, %c0_13] : memref<64x6xbf16, #tpu.memory_space<vmem>>, vector<64x6xbf16>
    %cst_14 = arith.constant dense<0.000000e+00> : vector<16x6xf32>
    %18 = tpu.matmul %16, %17, %cst_14 {dimension_numbers = #tpu.dot_dimension_numbers<[1], [0], [0], [1], [0, 0, 1, 1], [], []>} : vector<16x64xbf16>, vector<64x6xbf16>, vector<16x6xf32> -> vector<16x6xf32>
    %c0_15 = arith.constant 0 : index
    %c0_16 = arith.constant 0 : index
    %19 = vector.load %arg7[%c0_15, %c0_16] : memref<1x6xf32, #tpu.memory_space<vmem>>, vector<1x6xf32>
    %20 = vector.broadcast %19 : vector<1x6xf32> to vector<16x6xf32>
    %21 = arith.addf %18, %20 : vector<16x6xf32>
    %c0_17 = arith.constant 0 : index
    %c0_18 = arith.constant 0 : index
    %22 = vector.load %arg8[%c0_17, %c0_18] : memref<16x6xf32, #tpu.memory_space<vmem>>, vector<16x6xf32>
    tpu.vector_store %arg8[%c0_17, %c0_18], %21 {strides = array<i32>} : memref<16x6xf32, #tpu.memory_space<vmem>>, vector<16x6xf32>,
    return
  }
  func.func @transform_0(%arg0: i32) -> (i32, i32) {
    %c0_i32 = arith.constant 0 : i32
    %c0_i32_0 = arith.constant 0 : i32
    return %arg0, %c0_i32 : i32, i32
  }
  func.func @transform_1(%arg0: i32) -> (i32, i32) {
    %c0_i32 = arith.constant 0 : i32
    %c0_i32_0 = arith.constant 0 : i32
    %c0_i32_1 = arith.constant 0 : i32
    return %c0_i32, %c0_i32_0 : i32, i32
  }
  func.func @transform_2(%arg0: i32) -> (i32, i32) {
    %c0_i32 = arith.constant 0 : i32
    %c0_i32_0 = arith.constant 0 : i32
    %c0_i32_1 = arith.constant 0 : i32
    return %c0_i32, %c0_i32_0 : i32, i32
  }
  func.func @transform_3(%arg0: i32) -> (i32, i32) {
    %c0_i32 = arith.constant 0 : i32
    %c0_i32_0 = arith.constant 0 : i32
    %c0_i32_1 = arith.constant 0 : i32
    return %c0_i32, %c0_i32_0 : i32, i32
  }
  func.func @transform_4(%arg0: i32) -> (i32, i32) {
    %c0_i32 = arith.constant 0 : i32
    %c0_i32_0 = arith.constant 0 : i32
    %c0_i32_1 = arith.constant 0 : i32
    return %c0_i32, %c0_i32_0 : i32, i32
  }
  func.func @transform_5(%arg0: i32) -> (i32, i32) {
    %c0_i32 = arith.constant 0 : i32
    %c0_i32_0 = arith.constant 0 : i32
    %c0_i32_1 = arith.constant 0 : i32
    return %c0_i32, %c0_i32_0 : i32, i32
  }
  func.func @transform_6(%arg0: i32) -> (i32, i32) {
    %c0_i32 = arith.constant 0 : i32
    %c0_i32_0 = arith.constant 0 : i32
    %c0_i32_1 = arith.constant 0 : i32
    return %c0_i32, %c0_i32_0 : i32, i32
  }
  func.func @transform_7(%arg0: i32) -> (i32, i32) {
    %c0_i32 = arith.constant 0 : i32
    %c0_i32_0 = arith.constant 0 : i32
    return %arg0, %c0_i32 : i32, i32
  }
}

</mosaic_0001>

<bundles_post_ra>
// kernel: tpu_custom_call.1
= control target key start
LH: loop header
LB: loop body
LE: loop exit
PB: predicated region body
PF: predicated region fallthrough
CT: control target
= control target key end

     0   :  { %v392_v0 = vmov 0.0   ;;  %vm393_vm0 = vmmov 0   ;;  %vm49_vm1 = vcmask 130048   ;;  %vm251_vm2 = vcmask 523264   ;;  %s491_s1 = inlined_call_operand.vmem [shape: bf16[16,128], index: 1, kind: input, shape index: {}]   ;;  %s492_s0 = inlined_call_operand.vmem [shape: bf16[16,16], index: 0, kind: input, shape index: {}]   ;;  %s493_s3 = inlined_call_operand.vmem [shape: bf16[128,64], index: 3, kind: input, shape index: {}]   ;;  %s494_s5 = inlined_call_operand.vmem [shape: bf16[64,6], index: 5, kind: input, shape index: {}]   ;;  %s495_s2 = inlined_call_operand.vmem [shape: f32[1,128], index: 2, kind: input, shape index: {}]   ;;  %s496_s4 = inlined_call_operand.vmem [shape: f32[1,64], index: 4, kind: input, shape index: {}]   ;;  %s497_s6 = inlined_call_operand.vmem [shape: f32[1,6], index: 6, kind: input, shape index: {}]   ;;  %s498_s7 = inlined_call_operand.vmem [shape: f32[16,6], index: 7, kind: output, shape index: {}]  }
   0x1   :  { %338 = vmatprep.subr.bf16.mxu0 %v392_v0  ;;  %v378_v1 = vld [vmem:[%s491_s1] sm:$0xff]   ;;  %340 = vmatprep.mubr.msk.bf16.mxu0 %vm393_vm0, %v392_v0  ;;  %v381_v4 = vld [vmem:[%s493_s3 + $0x8] sm:$0xff]   ;;  %v382_v5 = vld [vmem:[%s493_s3 + $0x10] sm:$0xff]   ;;  %vm296_vm3 = vcmask 48128  }
   0x2   :  { %v379_v2 = vld [vmem:[%s492_s0] sm:$0xff]   ;;  %344 = vmatprep.subr.bf16.mxu1 %v392_v0  ;;  %360 = vmatprep.mubr.msk.bf16.mxu1 %vm393_vm0, %v392_v0  ;;  %v383_v6 = vld [vmem:[%s493_s3 + $0x18] sm:$0xff]   ;;  %v385_v8 = vld [vmem:[%s493_s3 + $0x28] sm:$0xff]  }
   0x3   :  { %339 = vmatpush3.bf16.msra.mxu0 %v378_v1  ;;  %v380_v3 = vld [vmem:[%s493_s3] sm:$0xff]   ;;  %v386_v9 = vld [vmem:[%s493_s3 + $0x30] sm:$0xff]   ;;  %v387_v10 = vld [vmem:[%s493_s3 + $0x38] sm:$0xff]  }
   0x4   :  { %364 = vmatprep.subr.bf16.mxu0 %v392_v0  ;;  %345 = vmatpush3.bf16.msra.mxu1 %v380_v3  ;;  %v384_v7 = vld [vmem:[%s493_s3 + $0x20] sm:$0xff]   ;;  %v389_v12 = vld [vmem:[%s494_s5 + $0x8] sm:$0xff]   ;;  %v390_v23 = vld [vmem:[%s494_s5 + $0x10] sm:$0xff]  }
   0x5   :  { %346 = vmatprep.subr.bf16.mxu1 %v392_v0  ;;  %v388_v11 = vld [vmem:[%s494_s5] sm:$0xff]   ;;  %v391_v24 = vld [vmem:[%s494_s5 + $0x18] sm:$0xff]  }
   0x6   :  { %341 = vmatmul.mubr.msk.bf16.vlgmr.msra.gmra.mrb[0].mxu0 %vm49_vm1, %v379_v2  ;;  %v303_v13 = vld [vmem:[%s495_s2] ss:$0 sm:$0xff] }
   0x7   :  { %372 = vmatprep.mubr.msk.bf16.mxu0 %vm393_vm0, %v392_v0  ;;  %365 = vmatpush3.bf16.msra.mxu0 %v388_v11  ;;  %v307_v25 = vld [vmem:[%s496_s4] ss:$0 sm:$0xff] }
   0x8   :  { %347 = vmatpush3.bf16.msra.mxu1 %v381_v4  ;;  %366 = vmatprep.subr.bf16.mxu0 %v392_v0  ;;  %v316_v35 = vld [vmem:[%s497_s6] ss:$0 sm:$0xff] }
   0x9   :  { %348 = vmatprep.subr.bf16.mxu1 %v392_v0 }
   0xb   :  { %367 = vmatpush3.bf16.msra.mxu0 %v389_v12 }
   0xc   :  { %349 = vmatpush3.bf16.msra.mxu1 %v382_v5  ;;  %368 = vmatprep.subr.bf16.mxu0 %v392_v0 }
   0xd   :  { %350 = vmatprep.subr.bf16.mxu1 %v392_v0 }
   0xf   :  { %369 = vmatpush3.bf16.msra.mxu0 %v390_v23 }
  0x10   :  { %351 = vmatpush3.bf16.msra.mxu1 %v383_v6  ;;  %370 = vmatprep.subr.bf16.mxu0 %v392_v0 }
  0x11   :  { %352 = vmatprep.subr.bf16.mxu1 %v392_v0 }
  0x13   :  { %371 = vmatpush3.bf16.msra.mxu0 %v391_v24 }
  0x14   :  { %353 = vmatpush3.bf16.msra.mxu1 %v384_v7 }
  0x15   :  { %354 = vmatprep.subr.bf16.mxu1 %v392_v0 }
  0x18   :  { %355 = vmatpush3.bf16.msra.mxu1 %v385_v8 }
  0x19   :  { %356 = vmatprep.subr.bf16.mxu1 %v392_v0 }
  0x1c   :  { %357 = vmatpush3.bf16.msra.mxu1 %v386_v9 }
  0x1d   :  { %358 = vmatprep.subr.bf16.mxu1 %v392_v0 }
  0x20   :  { %359 = vmatpush3.bf16.msra.mxu1 %v387_v10 }
  0xd9   :  { %v87_v14 = vpop.f32.mrb[0].mxu0 }
  0xda   :  { %v88_v15 = vadd.f32 %v303_v13, %v87_v14  ;;  %v342_v16 = vpop.f32.mrb[1].mxu0 }
  0xdb   :  { %v90_v17 = vpop.f32.mrb[2].mxu0 }
  0xdc   :  { %v91_v18 = vadd.f32 %v303_v13, %v90_v17  ;;  %v343_v19 = vpop.f32.mrb[3].mxu0  ;;  %v94_v20 = vmax.f32 %v88_v15, 0.0 }
  0xde   :  { %v95_v21 = vmax.f32 %v91_v18, 0.0 }
  0xe0   :  { %v96_v22 = vpack.c.bf16 %v95_v21, %v94_v20 }
  0xe2   :  { %361 = vmatmul.mubr.bf16.vlgmr.msra.gmra.mrb[0].mxu1 %v96_v22 }
 0x1b5   :  { %v202_v26 = vpop.f32.mrb[0].mxu1 }
 0x1b6   :  { %v203_v27 = vadd.f32 %v307_v25, %v202_v26  ;;  %v362_v28 = vpop.f32.mrb[1].mxu1 }
 0x1b7   :  { %v205_v29 = vpop.f32.mrb[2].mxu1 }
 0x1b8   :  { %v206_v30 = vadd.f32 %v307_v25, %v205_v29  ;;  %v363_v31 = vpop.f32.mrb[3].mxu1  ;;  %v209_v32 = vmax.f32 %v203_v27, 0.0 }
 0x1ba   :  { %v210_v33 = vmax.f32 %v206_v30, 0.0 }
 0x1bc   :  { %v211_v34 = vpack.c.bf16 %v210_v33, %v209_v32 }
 0x1be   :  { %373 = vmatmul.mubr.msk.bf16.vlgmr.msra.gmra.mrb[4].mxu0 %vm251_vm2, %v211_v34 }
 0x291   :  { %v289_v36 = vpop.f32.mrb[4].mxu0 }
 0x292   :  { %v290_v37 = vadd.f32 %v316_v35, %v289_v36  ;;  %v374_v38 = vpop.f32.mrb[5].mxu0 }
 0x293   :  { %v292_v39 = vpop.f32.mrb[6].mxu0 }
 0x294   :  { %297 = vst.msk [vmem:[%s498_s7] sm:$0xff] %vm296_vm3, %v290_v37  ;;  %v293_v40 = vadd.f32 %v316_v35, %v292_v39  ;;  %v375_v41 = vpop.f32.mrb[7].mxu0 }
 0x296   :  { %298 = vst.msk [vmem:[%s498_s7 + $0x8] sm:$0xff] %vm296_vm3, %v293_v40 }

</bundles_post_ra>
